<compile_context>
chip_gen: v6e
topology: v6e:2x2x1
jax: 0.10.0
libtpu: 0.0.40
codegen_flags: <defaults>
</compile_context>

<pallas_src>
import jax
import jax.numpy as jnp
from jax.experimental import pallas as pl
from jax.experimental.pallas import tpu as pltpu

# ---------------- synthetic mini-CLIP configuration ----------------
IMG = 16
PATCH = 4
GRID_HW = IMG // PATCH           # 4
N_PATCH = GRID_HW * GRID_HW      # 16
T = N_PATCH + 1                  # 17 tokens (cls + patches)
IN_CH = 3
WIDTH = 32
HEADS = 4                        # == num_res_attn_blocks (as in ViT-B: 12 == 12)
LAYERS = 4                       # number of residual attention blocks
HEAD_DIM = WIDTH // HEADS
MLP = 2 * WIDTH
OUT_DIM = 16                     # CLIP joint embedding dim
NUM_LAYERS = 1                   # blocks with i <= NUM_LAYERS are skipped in interpret()
POSITIVE_ATTN_ONLY = False       # module default (positive_attn_only=False)


# ---------------------------------------------------------------------------
# Pallas kernel: grad-CAM relevance propagation (the interpret() loop)
#   attn_used: (Lu, B, H, T, T)        grad_used: (Lu, P, B, H, T, T)
#   output R : (P, B, T, T)
#
# Grid is (Lu,) only — layers iterate sequentially ("arbitrary") while the
# output block stays resident in VMEM and acts as the accumulator (P3 pattern).
# NOTE: the init gate on l == 0 is only correct while the layer axis is the
# sole (innermost, sequential) grid axis; do not add parallel axes after it.
# ---------------------------------------------------------------------------
def relprop_pallas(attn_used, grad_used, positive_attn_only=False):
    Lu, B, H, TT, _ = attn_used.shape
    P = grad_used.shape[1]

    def kernel(attn_ref, grad_ref, r_ref):
        l = pl.program_id(0)

        @pl.when(l == 0)
        def _():
            # R := I, broadcast over (P, B)
            row = jax.lax.broadcasted_iota(jnp.int32, (TT, TT), 0)
            col = jax.lax.broadcasted_iota(jnp.int32, (TT, TT), 1)
            eye = (row == col).astype(jnp.float32)
            r_ref[...] = jnp.broadcast_to(eye, (P, B, TT, TT))

        attn = attn_ref[...]                              # (B, H, T, T)
        grad = grad_ref[...]                              # (P, B, H, T, T)
        cam = grad * attn[None]                           # broadcast over prompts
        if positive_attn_only:
            cam = jnp.maximum(cam, 0.0)
        cam = cam.mean(axis=2)                            # head mean -> (P, B, T, T)

        r = r_ref[...]                                    # resident accumulator
        cam2 = cam.reshape(P * B, TT, TT)
        r2 = r.reshape(P * B, TT, TT)
        upd = jnp.einsum("bij,bjk->bik", cam2, r2,
                         preferred_element_type=jnp.float32)
        r_ref[...] = r + upd.reshape(P, B, TT, TT)

    return pl.pallas_call(
        kernel,
        out_shape=jax.ShapeDtypeStruct((P, B, TT, TT), jnp.float32),
        grid_spec=pltpu.PrefetchScalarGridSpec(
            num_scalar_prefetch=0,
            grid=(Lu,),
            in_specs=[
                # attn_probs do not depend on the prompt (the .repeat in torch);
                # fetched exactly once per layer now.
                pl.BlockSpec((None, B, H, TT, TT),
                             lambda l: (l, 0, 0, 0, 0)),
                pl.BlockSpec((None, P, B, H, TT, TT),
                             lambda l: (l, 0, 0, 0, 0, 0)),
            ],
            out_specs=pl.BlockSpec((P, B, TT, TT),
                                   lambda l: (0, 0, 0, 0)),
        ),
        compiler_params=pltpu.CompilerParams(
            dimension_semantics=("arbitrary",)),
    )(attn_used, grad_used)


# ---------------------------------------------------------------------------
# Synthetic mini-ViT visual encoder (plain JAX glue, differentiable)
# ---------------------------------------------------------------------------
def init_params(key):
    keys = jax.random.split(key, 4 + LAYERS)
    s = 0.02
    params = {
        "patch_w": s * jax.random.normal(keys[0], (IN_CH * PATCH * PATCH, WIDTH), jnp.float32),
        "cls": s * jax.random.normal(keys[1], (WIDTH,), jnp.float32),
        "pos": s * jax.random.normal(keys[2], (T, WIDTH), jnp.float32),
        "ln_pre_g": jnp.ones((WIDTH,), jnp.float32),
        "ln_pre_b": jnp.zeros((WIDTH,), jnp.float32),
        "ln_post_g": jnp.ones((WIDTH,), jnp.float32),
        "ln_post_b": jnp.zeros((WIDTH,), jnp.float32),
        "proj": s * jax.random.normal(keys[3], (WIDTH, OUT_DIM), jnp.float32),
        "blocks": [],
    }
    for i in range(LAYERS):
        k = jax.random.split(keys[4 + i], 4)
        params["blocks"].append({
            "ln1_g": jnp.ones((WIDTH,), jnp.float32), "ln1_b": jnp.zeros((WIDTH,), jnp.float32),
            "ln2_g": jnp.ones((WIDTH,), jnp.float32), "ln2_b": jnp.zeros((WIDTH,), jnp.float32),
            "w_qkv": s * jax.random.normal(k[0], (WIDTH, 3 * WIDTH), jnp.float32),
            "b_qkv": jnp.zeros((3 * WIDTH,), jnp.float32),
            "w_out": s * jax.random.normal(k[1], (WIDTH, WIDTH), jnp.float32),
            "b_out": jnp.zeros((WIDTH,), jnp.float32),
            "w_fc1": s * jax.random.normal(k[2], (WIDTH, MLP), jnp.float32),
            "b_fc1": jnp.zeros((MLP,), jnp.float32),
            "w_fc2": s * jax.random.normal(k[3], (MLP, WIDTH), jnp.float32),
            "b_fc2": jnp.zeros((WIDTH,), jnp.float32),
        })
    return params


def layer_norm(x, g, b, eps=1e-5):
    mu = x.mean(-1, keepdims=True)
    var = ((x - mu) ** 2).mean(-1, keepdims=True)
    return (x - mu) / jnp.sqrt(var + eps) * g + b


def attn_block(x, p, delta):
    # x: (B, T, WIDTH), delta: (B, HEADS, T, T) hook on softmax output
    B = x.shape[0]
    y = layer_norm(x, p["ln1_g"], p["ln1_b"])
    qkv = y @ p["w_qkv"] + p["b_qkv"]
    q, k, v = jnp.split(qkv, 3, axis=-1)

    def split_heads(z):
        return z.reshape(B, T, HEADS, HEAD_DIM).transpose(0, 2, 1, 3)

    q, k, v = split_heads(q), split_heads(k), split_heads(v)
    scores = jnp.einsum("bhqd,bhkd->bhqk", q, k) / jnp.sqrt(float(HEAD_DIM))
    probs = jax.nn.softmax(scores, axis=-1) + delta          # attn_probs hook
    out = jnp.einsum("bhqk,bhkd->bhqd", probs, v)
    out = out.transpose(0, 2, 1, 3).reshape(B, T, WIDTH) @ p["w_out"] + p["b_out"]
    x = x + out
    y2 = layer_norm(x, p["ln2_g"], p["ln2_b"])
    h = y2 @ p["w_fc1"] + p["b_fc1"]
    h = h * jax.nn.sigmoid(1.702 * h)                        # QuickGELU
    x = x + h @ p["w_fc2"] + p["b_fc2"]
    return x, probs


def encode_image(x_nchw, params, deltas):
    # layout: NCHW input; patch embedding == Conv2d(stride=patch, bias=False)
    B = x_nchw.shape[0]
    x = x_nchw.reshape(B, IN_CH, GRID_HW, PATCH, GRID_HW, PATCH)
    x = x.transpose(0, 2, 4, 1, 3, 5).reshape(B, N_PATCH, IN_CH * PATCH * PATCH)
    x = x @ params["patch_w"]                                # (B, N_PATCH, WIDTH)
    cls = jnp.broadcast_to(params["cls"], (B, 1, WIDTH))
    x = jnp.concatenate([cls, x], axis=1) + params["pos"]
    x = layer_norm(x, params["ln_pre_g"], params["ln_pre_b"])
    attns = []
    for i in range(LAYERS):
        x, probs = attn_block(x, params["blocks"][i], deltas[i])
        attns.append(probs)
    x = layer_norm(x[:, 0], params["ln_post_g"], params["ln_post_b"])
    feats = x @ params["proj"]                               # (B, OUT_DIM)
    return feats, attns


# ---------------------------------------------------------------------------
# ClipGradcam.forward equivalent (returns image_relevance, like the module)
# ---------------------------------------------------------------------------
def clip_gradcam_forward(x, params, zeroshot_weights):
    B = x.shape[0]
    deltas0 = [jnp.zeros((B, HEADS, T, T), jnp.float32) for _ in range(LAYERS)]

    # Differentiable path (pure JAX) — obtains d(sum_b logit_p)/d(attn_probs),
    # mirroring torch.autograd.grad(one_hot[p], block.attn_probs). The tiny
    # normalize + 100 * feat @ zeroshot_weights matmul lives here too (the
    # separate Pallas logits kernel was pure launch overhead and duplicated
    # this exact computation).
    # TODO(synk): pallas_call has no registered VJP, so the gradient path must
    # stay in plain JAX under jax.jacrev.
    def summed_logits(deltas):
        feats, attns = encode_image(x, params, deltas)
        fn = feats / jnp.linalg.norm(feats, axis=-1, keepdims=True)
        logits = 100.0 * fn @ zeroshot_weights               # (B, P)
        return logits.sum(0), attns

    grads, attns = jax.jacrev(summed_logits, has_aux=True)(deltas0)
    # grads[i]: (P, B, HEADS, T, T);  attns[i]: (B, HEADS, T, T)

    # interpret(): only blocks with i > NUM_LAYERS participate.
    used = [i for i in range(LAYERS) if i > NUM_LAYERS]
    attn_used = jnp.stack([attns[i] for i in used], axis=0)     # (Lu, B, H, T, T)
    grad_used = jnp.stack([grads[i] for i in used], axis=0)     # (Lu, P, B, H, T, T)

    R = relprop_pallas(attn_used, grad_used, POSITIVE_ATTN_ONLY)  # (P, B, T, T)
    P = zeroshot_weights.shape[1]
    image_relevance = R[:, :, 0, 1:].reshape(P, B, GRID_HW, GRID_HW)
    return image_relevance


# ---------------------------------------------------------------------------
# zeroshot_classifier equivalent with synthetic text embeddings
# ---------------------------------------------------------------------------
def synthetic_zeroshot_weights(key, num_classes, num_templates, dim):
    emb = jax.random.normal(key, (num_classes, num_templates, dim), jnp.float32)
    emb = emb / jnp.linalg.norm(emb, axis=-1, keepdims=True)
    return emb.mean(axis=1).T                                  # (dim, num_classes)


if __name__ == "__main__":
    key = jax.random.PRNGKey(0)
    k_params, k_x, k_text = jax.random.split(key, 3)

    params = init_params(k_params)

    # input image batch, NCHW like the PyTorch module
    B = 2
    x = jax.random.normal(k_x, (B, IN_CH, IMG, IMG), jnp.float32)

    # synthetic "language features" (stand-in for tokenize + encode_text)
    classes = ["cat", "dog", "bird"]
    templates = ["a photo of a {}.", "an image of a {}."]
    zw_all = synthetic_zeroshot_weights(k_text, len(classes), len(templates), OUT_DIM)
    class_to_language_feature = {c: zw_all[:, i:i + 1] for i, c in enumerate(classes)}

    # prompts passed to forward(x, o)
    o = ["cat", "bird"]
    zeroshot_weights = jnp.concatenate(
        [class_to_language_feature[c] for c in o], axis=1)      # (OUT_DIM, P)

    image_relevance = clip_gradcam_forward(x, params, zeroshot_weights)
    jax.block_until_ready(image_relevance)

    assert image_relevance.shape == (len(o), B, GRID_HW, GRID_HW)
    assert bool(jnp.all(jnp.isfinite(image_relevance)))
    print("KERNEL_OK")
</pallas_src>

<mosaic_0001>
module attributes {stable_mosaic.version = 11 : i64} {
  func.func @kernel(%arg0: i32, %arg1: memref<1x2x4x17x17xf32, #tpu.memory_space<vmem>>, %arg2: memref<1x2x2x4x17x17xf32, #tpu.memory_space<vmem>>, %arg3: memref<2x2x17x17xf32, #tpu.memory_space<vmem>>) attributes {dimension_semantics = [#tpu.dimension_semantics<arbitrary>], iteration_bounds = array<i64: 2>, scalar_prefetch = 0 : i64, scratch_operands = 0 : i64, tpu.core_type = #tpu.core_type<tc>, window_params = [{transform_indices = @transform_0, window_bounds = array<i64: 1, 2, 4, 17, 17>}, {transform_indices = @transform_1, window_bounds = array<i64: 1, 2, 2, 4, 17, 17>}, {pipeline_mode = #tpu.pipeline_mode<synchronous>, transform_indices = @transform_2, window_bounds = array<i64: 2, 2, 17, 17>}]} {
    %c0_i32 = arith.constant 0 : i32
    %0 = arith.cmpi eq, %arg0, %c0_i32 : i32
    %1 = arith.extui %0 : i1 to i32
    %c0_i32_0 = arith.constant 0 : i32
    %2 = arith.cmpi ne, %1, %c0_i32_0 : i32
    scf.if %2 {
      %20 = tpu.iota {dimensions = array<i32: 0>} : vector<17x17xi32>
      %21 = tpu.iota {dimensions = array<i32: 1>} : vector<17x17xi32>
      %22 = arith.cmpi eq, %20, %21 : vector<17x17xi32>
      %23 = arith.extui %22 : vector<17x17xi1> to vector<17x17xi32>
      %24 = arith.sitofp %23 : vector<17x17xi32> to vector<17x17xf32>
      %25 = vector.shape_cast %24 : vector<17x17xf32> to vector<1x1x17x17xf32>
      %26 = vector.broadcast %25 : vector<1x1x17x17xf32> to vector<2x2x17x17xf32>
      %c0_21 = arith.constant 0 : index
      %c0_22 = arith.constant 0 : index
      %c0_23 = arith.constant 0 : index
      %c0_24 = arith.constant 0 : index
      %27 = vector.load %arg3[%c0_21, %c0_22, %c0_23, %c0_24] : memref<2x2x17x17xf32, #tpu.memory_space<vmem>>, vector<2x2x17x17xf32>
      tpu.vector_store %arg3[%c0_21, %c0_22, %c0_23, %c0_24], %26 {strides = array<i32>} : memref<2x2x17x17xf32, #tpu.memory_space<vmem>>, vector<2x2x17x17xf32>,
    } else {
    }
    %c0 = arith.constant 0 : index
    %c0_1 = arith.constant 0 : index
    %c0_2 = arith.constant 0 : index
    %c0_3 = arith.constant 0 : index
    %c0_4 = arith.constant 0 : index
    %3 = vector.load %arg1[%c0, %c0_1, %c0_2, %c0_3, %c0_4] : memref<1x2x4x17x17xf32, #tpu.memory_space<vmem>>, vector<1x2x4x17x17xf32>
    %4 = vector.shape_cast %3 : vector<1x2x4x17x17xf32> to vector<2x4x17x17xf32>
    %c0_5 = arith.constant 0 : index
    %c0_6 = arith.constant 0 : index
    %c0_7 = arith.constant 0 : index
    %c0_8 = arith.constant 0 : index
    %c0_9 = arith.constant 0 : index
    %c0_10 = arith.constant 0 : index
    %5 = vector.load %arg2[%c0_5, %c0_6, %c0_7, %c0_8, %c0_9, %c0_10] : memref<1x2x2x4x17x17xf32, #tpu.memory_space<vmem>>, vector<1x2x2x4x17x17xf32>
    %6 = vector.shape_cast %5 : vector<1x2x2x4x17x17xf32> to vector<2x2x4x17x17xf32>
    %7 = vector.shape_cast %4 : vector<2x4x17x17xf32> to vector<1x2x4x17x17xf32>
    %8 = vector.broadcast %7 : vector<1x2x4x17x17xf32> to vector<2x2x4x17x17xf32>
    %9 = arith.mulf %6, %8 : vector<2x2x4x17x17xf32>
    %cst = arith.constant dense<0.000000e+00> : vector<2x2x17x17xf32>
    %10 = vector.multi_reduction <add>, %9, %cst [2] : vector<2x2x4x17x17xf32> to vector<2x2x17x17xf32>
    %cst_11 = arith.constant 4.000000e+00 : f32
    %11 = vector.broadcast %cst_11 : f32 to vector<2x2x17x17xf32>
    %12 = arith.divf %10, %11 : vector<2x2x17x17xf32>
    %c0_12 = arith.constant 0 : index
    %c0_13 = arith.constant 0 : index
    %c0_14 = arith.constant 0 : index
    %c0_15 = arith.constant 0 : index
    %13 = vector.load %arg3[%c0_12, %c0_13, %c0_14, %c0_15] : memref<2x2x17x17xf32, #tpu.memory_space<vmem>>, vector<2x2x17x17xf32>
    %14 = vector.shape_cast %12 : vector<2x2x17x17xf32> to vector<4x17x17xf32>
    %15 = vector.shape_cast %13 : vector<2x2x17x17xf32> to vector<4x17x17xf32>
    "tpu.trace_start"() <{level = 10 : i32, message = "bij,bjk->bik"}> : () -> ()
    %cst_16 = arith.constant dense<0.000000e+00> : vector<4x17x17xf32>
    %16 = tpu.matmul %14, %15, %cst_16 {dimension_numbers = #tpu.dot_dimension_numbers<[2], [1], [1], [2], [0, 0, 0, 1, 1, 2], [0], [0]>} : vector<4x17x17xf32>, vector<4x17x17xf32>, vector<4x17x17xf32> -> vector<4x17x17xf32>
    "tpu.trace_stop"() : () -> ()
    %17 = vector.shape_cast %16 : vector<4x17x17xf32> to vector<2x2x17x17xf32>
    %18 = arith.addf %13, %17 : vector<2x2x17x17xf32>
    %c0_17 = arith.constant 0 : index
    %c0_18 = arith.constant 0 : index
    %c0_19 = arith.constant 0 : index
    %c0_20 = arith.constant 0 : index
    %19 = vector.load %arg3[%c0_17, %c0_18, %c0_19, %c0_20] : memref<2x2x17x17xf32, #tpu.memory_space<vmem>>, vector<2x2x17x17xf32>
    tpu.vector_store %arg3[%c0_17, %c0_18, %c0_19, %c0_20], %18 {strides = array<i32>} : memref<2x2x17x17xf32, #tpu.memory_space<vmem>>, vector<2x2x17x17xf32>,
    return
  }
  func.func @transform_0(%arg0: i32) -> (i32, i32, i32, i32, i32) {
    %c0_i32 = arith.constant 0 : i32
    %c0_i32_0 = arith.constant 0 : i32
    %c0_i32_1 = arith.constant 0 : i32
    %c0_i32_2 = arith.constant 0 : i32
    %c0_i32_3 = arith.constant 0 : i32
    return %arg0, %c0_i32, %c0_i32_0, %c0_i32_1, %c0_i32_2 : i32, i32, i32, i32, i32
  }
  func.func @transform_1(%arg0: i32) -> (i32, i32, i32, i32, i32, i32) {
    %c0_i32 = arith.constant 0 : i32
    %c0_i32_0 = arith.constant 0 : i32
    %c0_i32_1 = arith.constant 0 : i32
    %c0_i32_2 = arith.constant 0 : i32
    %c0_i32_3 = arith.constant 0 : i32
    %c0_i32_4 = arith.constant 0 : i32
    return %arg0, %c0_i32, %c0_i32_0, %c0_i32_1, %c0_i32_2, %c0_i32_3 : i32, i32, i32, i32, i32, i32
  }
  func.func @transform_2(%arg0: i32) -> (i32, i32, i32, i32) {
    %c0_i32 = arith.constant 0 : i32
    %c0_i32_0 = arith.constant 0 : i32
    %c0_i32_1 = arith.constant 0 : i32
    %c0_i32_2 = arith.constant 0 : i32
    %c0_i32_3 = arith.constant 0 : i32
    return %c0_i32, %c0_i32_0, %c0_i32_1, %c0_i32_2 : i32, i32, i32, i32
  }
}

</mosaic_0001>

<bundles_post_ra>
// kernel: tpu_custom_call.1
= control target key start
LH: loop header
LB: loop body
LE: loop exit
PB: predicated region body
PF: predicated region fallthrough
CT: control target
= control target key end

     0   :  { %s997_s9 = smov 0   ;;  %s1440_s0 = inlined_call_operand.vmem [shape: f32[2,2,4,17,17], index: 0, kind: input, shape index: {}]   ;;  %s1441_s1 = inlined_call_operand.vmem [shape: f32[2,2,2,4,17,17], index: 1, kind: input, shape index: {}]   ;;  %s1442_s2 = inlined_call_operand.vmem [shape: f32[2,2,17,17], index: 2, kind: output, shape index: {}]  }
   0x1 LB: > { %s846_s10 = sadd.s32 4294967295, %s977_s9   ;;  %p849_p0 = scmp.ge.s32.totalorder %s977_s9, 1  ;;  %s977_s9 = sphi %s997_s9, %s12_s9  }
   0x2   : > { %p117_p1 = scmp.lt.s32.totalorder %s977_s9, 3 }
   0x4   : > { %p118_p2 = pnand %p849_p0, %p117_p1 }
   0x5   : > { %p139_p3 = scmp.lt.s32.totalorder (!%p118_p2), %s846_s10, 1  ;;  %p852_p4 = scmp.ne.s32.totalorder (!%p118_p2), %s846_s10, 0 }
   0x6   : > { %121 = sbr.rel (%p118_p2) target bundleno = 273 (0x111), region = 28 }
   0xb   : > { %s140_s11 = scalar_select %p139_p3, %s846_s10, 1 }
   0xc   : > { %152 = sbr.rel (%p852_p4) target bundleno = 29 (0x1d), region = 32 }
   0xd   : > { %s958_s12 = smul.u32 192, %s140_s11 }
   0xe   : > { %s959_s13 = smul.u32 384, %s140_s11 }
   0xf   : > { %s1008_s16 = scalar_lea.vmem %s1440_s0, %s958_s12 }
  0x10   : > { %s1013_s19 = scalar_lea.vmem %s1441_s1, %s959_s13 }
  0x11   : > { %v153_v0 = vlaneseq  ;;  %vm168_vm0 = vcmask 138240   ;;  %v979_v5 = vmov 0.0   ;;  %vm171_vm2 = vcmask 131072  }
  0x13   : > { %v154_v1 = vshrl.u32 %v153_v0, 7  ;;  %v158_v2 = vand.u32 127, %v153_v0 }
  0x15   : > { %vm159_vm1 = vcmp.eq.s32.totalorder %v154_v1, %v158_v2  ;;  %v155_v3 = vadd.s32 8, %v154_v1  ;;  %v156_v4 = vadd.s32 16, %v154_v1 }
  0x16   : > { %v853_v6 = vsel %vm159_vm1, 1.0, %v979_v5 }
  0x17   : > { %169 = vst.msk [vmem:[%s1442_s2] sm:$0xff] %vm168_vm0, %v853_v6  ;;  %173 = vst.msk [vmem:[%s1442_s2 + $0x18] sm:$0xff] %vm168_vm0, %v853_v6  ;;  %vm160_vm3 = vcmp.eq.s32.totalorder %v155_v3, %v158_v2  ;;  %vm161_vm4 = vcmp.eq.s32.totalorder %v156_v4, %v158_v2 }
  0x18   : > { %176 = vst.msk [vmem:[%s1442_s2 + $0x30] sm:$0xff] %vm168_vm0, %v853_v6  ;;  %179 = vst.msk [vmem:[%s1442_s2 + $0x48] sm:$0xff] %vm168_vm0, %v853_v6  ;;  %v854_v7 = vsel %vm160_vm3, 1.0, %v979_v5  ;;  %v855_v8 = vsel %vm161_vm4, 1.0, %v979_v5 }
  0x19   : > { %170 = vst.msk [vmem:[%s1442_s2 + $0x8] sm:$0xff] %vm168_vm0, %v854_v7  ;;  %174 = vst.msk [vmem:[%s1442_s2 + $0x20] sm:$0xff] %vm168_vm0, %v854_v7 }
  0x1a   : > { %177 = vst.msk [vmem:[%s1442_s2 + $0x38] sm:$0xff] %vm168_vm0, %v854_v7  ;;  %180 = vst.msk [vmem:[%s1442_s2 + $0x50] sm:$0xff] %vm168_vm0, %v854_v7 }
  0x1b   : > { %172 = vst.msk [vmem:[%s1442_s2 + $0x10] sm:$0x1] %vm171_vm2, %v855_v8  ;;  %175 = vst.msk [vmem:[%s1442_s2 + $0x28] sm:$0x1] %vm171_vm2, %v855_v8 }
  0x1c   : > { %178 = vst.msk [vmem:[%s1442_s2 + $0x40] sm:$0x1] %vm171_vm2, %v855_v8  ;;  %181 = vst.msk [vmem:[%s1442_s2 + $0x58] sm:$0x1] %vm171_vm2, %v855_v8 }
  0x1d PF: > { %vm422_vm5 = vcmask 1040384   ;;  %v980_v11 = vmov 0.0   ;;  %v182_v16 = vld [vmem:[%s1008_s16] sm:$0xff]  ;;  %v185_v17 = vld [vmem:[%s1008_s16 + $0x18] sm:$0xff]  ;;  %v188_v18 = vld [vmem:[%s1008_s16 + $0x30] sm:$0xff]  ;;  %vm302_vm6 = vcmask 138240  }
  0x1e   : > { %898 = vmatprep.subr.mxu0 %v980_v11  ;;  %913 = vmatprep.subr.mxu1 %v980_v11  ;;  %v1088_v14 = vld [vmem:[%s1442_s2] sm:$0xff]  ;;  %v1097_v15 = vld [vmem:[%s1442_s2 + $0x18] sm:$0xff]  ;;  %v191_v19 = vld [vmem:[%s1008_s16 + $0x48] sm:$0xff]  ;;  %vm981_vm7 = vmmov 0   ;;  %vm317_vm8 = vcmask 131072  }
  0x1f   : > { %v206_v20 = vld [vmem:[%s1013_s19] sm:$0xff]  ;;  %v209_v21 = vld [vmem:[%s1013_s19 + $0x18] sm:$0xff]  ;;  %v212_v22 = vld [vmem:[%s1013_s19 + $0x30] sm:$0xff]  ;;  %904 = vmatprep.mubr.msk.f32.mxu0 %vm981_vm7, %v980_v11  ;;  %919 = vmatprep.mubr.msk.f32.mxu1 %vm981_vm7, %v980_v11 }
  0x20   : > { %v1078_v12 = vld [vmem:[%s1442_s2 + $0x8] sm:$0xff]  ;;  %v1083_v13 = vld [vmem:[%s1442_s2 + $0x20] sm:$0xff]  ;;  %v254_v24 = vmul.f32 %v206_v20, %v182_v16  ;;  %v233_v26 = vld [vmem:[%s1013_s19 + $0xd8] sm:$0xff]  ;;  %v257_v28 = vmul.f32 %v209_v21, %v185_v17  ;;  %v260_v29 = vmul.f32 %v212_v22, %v188_v18 }
  0x21   : > { %v215_v23 = vld [vmem:[%s1013_s19 + $0x48] sm:$0xff]  ;;  %v230_v25 = vld [vmem:[%s1013_s19 + $0xc0] sm:$0xff]  ;;  %v236_v27 = vld [vmem:[%s1013_s19 + $0xf0] sm:$0xff]  ;;  %v281_v33 = vmul.f32 %v233_v26, %v185_v17 }
  0x22   : > { %v1066_v9 = vld [vmem:[%s1442_s2 + $0x10] sm:$0x1]  ;;  %v1071_v10 = vld [vmem:[%s1442_s2 + $0x28] sm:$0x1]  ;;  %v263_v30 = vmul.f32 %v215_v23, %v191_v19  ;;  %v278_v32 = vmul.f32 %v230_v25, %v182_v16  ;;  %v284_v34 = vmul.f32 %v236_v27, %v188_v18  ;;  %v303_v35 = vsel %vm302_vm6, %v254_v24, 0.0  ;;  %v194_v36 = vld [vmem:[%s1008_s16 + $0x60] sm:$0xff] }
  0x23   : > { %899 = vmatpush3.msk.msra.mxu0 %vm422_vm5, %v1066_v9  ;;  %914 = vmatpush3.msk.msra.mxu1 %vm422_vm5, %v1071_v10  ;;  %v239_v31 = vld [vmem:[%s1013_s19 + $0x108] sm:$0xff]  ;;  %v197_v37 = vld [vmem:[%s1008_s16 + $0x78] sm:$0xff]  ;;  %v304_v39 = vsel %vm302_vm6, %v257_v28, 0.0  ;;  %v306_v40 = vsel %vm302_vm6, %v260_v29, 0.0  ;;  %v200_v42 = vld [vmem:[%s1008_s16 + $0x90] sm:$0xff]  ;;  %v347_v47 = vsel %vm302_vm6, %v281_v33, 0.0 }
  0x24   : > { %900 = vmatprep.subr.mxu0 %v980_v11  ;;  %915 = vmatprep.subr.mxu1 %v980_v11  ;;  %v287_v38 = vmul.f32 %v239_v31, %v191_v19  ;;  %v308_v41 = vsel %vm302_vm6, %v263_v30, 0.0  ;;  %v203_v43 = vld [vmem:[%s1008_s16 + $0xa8] sm:$0xff]  ;;  %v218_v44 = vld [vmem:[%s1013_s19 + $0x60] sm:$0xff]  ;;  %v305_v45 = vadd.f32 %v304_v39, %v303_v35  ;;  %v346_v46 = vsel %vm302_vm6, %v278_v32, 0.0  ;;  %v221_v49 = vld [vmem:[%s1013_s19 + $0x78] sm:$0xff] }
  0x25   : > { %901 = vmatpush3.msra.mxu0 %v1078_v12  ;;  %916 = vmatpush3.msra.mxu1 %v1083_v13  ;;  %v349_v48 = vsel %vm302_vm6, %v284_v34, 0.0  ;;  %v224_v50 = vld [vmem:[%s1013_s19 + $0x90] sm:$0xff]  ;;  %v227_v51 = vld [vmem:[%s1013_s19 + $0xa8] sm:$0xff]  ;;  %v348_v52 = vadd.f32 %v347_v47, %v346_v46  ;;  %v242_v54 = vld [vmem:[%s1013_s19 + $0x120] sm:$0xff]  ;;  %v266_v57 = vmul.f32 %v218_v44, %v194_v36  ;;  %v269_v58 = vmul.f32 %v221_v49, %v197_v37 }
  0x26   : > { %902 = vmatprep.subr.mxu0 %v980_v11  ;;  %917 = vmatprep.subr.mxu1 %v980_v11  ;;  %v351_v53 = vsel %vm302_vm6, %v287_v38, 0.0  ;;  %v245_v55 = vld [vmem:[%s1013_s19 + $0x138] sm:$0xff]  ;;  %v248_v56 = vld [vmem:[%s1013_s19 + $0x150] sm:$0xff]  ;;  %v307_v59 = vadd.f32 %v306_v40, %v305_v45  ;;  %v251_v60 = vld [vmem:[%s1013_s19 + $0x168] sm:$0xff]  ;;  %v272_v61 = vmul.f32 %v224_v50, %v200_v42  ;;  %v275_v62 = vmul.f32 %v227_v51, %v203_v43 }
  0x27   : > { %903 = vmatpush3.msra.mxu0 %v1088_v14  ;;  %918 = vmatpush3.msra.mxu1 %v1097_v15  ;;  %v290_v63 = vmul.f32 %v242_v54, %v194_v36  ;;  %v350_v0 = vadd.f32 %v349_v48, %v348_v52  ;;  %v293_v1 = vmul.f32 %v245_v55, %v197_v37  ;;  %v1146_v4 = vld [vmem:[%s1008_s16 + $0x8] sm:$0xff]  ;;  %v1149_v5 = vld [vmem:[%s1008_s16 + $0x20] sm:$0xff]  ;;  %v1152_v6 = vld [vmem:[%s1008_s16 + $0x38] sm:$0xff]  ;;  %v325_v8 = vsel %vm302_vm6, %v266_v57, 0.0 }
  0x28   : > { %928 = vmatprep.subr.mxu0 %v980_v11  ;;  %943 = vmatprep.subr.mxu1 %v980_v11  ;;  %v296_v2 = vmul.f32 %v248_v56, %v200_v42  ;;  %v299_v3 = vmul.f32 %v251_v60, %v203_v43  ;;  %v309_v7 = vadd.f32 %v308_v41, %v307_v59  ;;  %v326_v16 = vsel %vm302_vm6, %v269_v58, 0.0  ;;  %v1160_v18 = vld [vmem:[%s1442_s2 + $0x40] sm:$0x1]  ;;  %v1163_v19 = vld [vmem:[%s1008_s16 + $0x50] sm:$0xff]  ;;  %v207_v20 = vld [vmem:[%s1013_s19 + $0x8] sm:$0xff] }
  0x29   : > { %v328_v17 = vsel %vm302_vm6, %v272_v61, 0.0  ;;  %v210_v21 = vld [vmem:[%s1013_s19 + $0x20] sm:$0xff]  ;;  %v352_v22 = vadd.f32 %v351_v53, %v350_v0  ;;  %v327_v23 = vadd.f32 %v326_v16, %v325_v8  ;;  %v330_v24 = vsel %vm302_vm6, %v275_v62, 0.0  ;;  %v213_v26 = vld [vmem:[%s1013_s19 + $0x38] sm:$0xff]  ;;  %v216_v27 = vld [vmem:[%s1013_s19 + $0x50] sm:$0xff] }
  0x2a   : > { %v367_v25 = vsel %vm302_vm6, %v290_v63, 0.0  ;;  %v1172_v28 = vld [vmem:[%s1008_s16 + $0x68] sm:$0xff]  ;;  %v389_v29 = vmul.f32 0.25, %v309_v7  ;;  %v368_v30 = vsel %vm302_vm6, %v293_v1, 0.0  ;;  %v370_v31 = vsel %vm302_vm6, %v296_v2, 0.0  ;;  %v1178_v33 = vld [vmem:[%s1008_s16 + $0x80] sm:$0xff] }
  0x2b   : > { %v372_v32 = vsel %vm302_vm6, %v299_v3, 0.0  ;;  %v1181_v34 = vld [vmem:[%s1008_s16 + $0x98] sm:$0xff]  ;;  %v1183_v35 = vmul.f32 0.25, %v352_v22  ;;  %v329_v36 = vadd.f32 %v328_v17, %v327_v23  ;;  %v369_v37 = vadd.f32 %v368_v30, %v367_v25  ;;  %v1187_v39 = vld [vmem:[%s1008_s16 + $0xb0] sm:$0xff]  ;;  %v219_v40 = vld [vmem:[%s1013_s19 + $0x68] sm:$0xff] }
  0x2c   : > { %v255_v38 = vmul.f32 %v207_v20, %v1146_v4  ;;  %v222_v41 = vld [vmem:[%s1013_s19 + $0x80] sm:$0xff]  ;;  %905 = vmatmul.mubr.msk.f32.vlgmr.msra.gmra.mxu0 %vm302_vm6, %v389_v29  ;;  %v258_v42 = vmul.f32 %v210_v21, %v1149_v5  ;;  %v261_v43 = vmul.f32 %v213_v26, %v1152_v6  ;;  %v264_v44 = vmul.f32 %v216_v27, %v1163_v19  ;;  %v225_v45 = vld [vmem:[%s1013_s19 + $0x98] sm:$0xff]  ;;  %v228_v46 = vld [vmem:[%s1013_s19 + $0xb0] sm:$0xff] }
  0x2d   : > { %v267_v47 = vmul.f32 %v219_v40, %v1172_v28  ;;  %v1201_v48 = vld [vmem:[%s1442_s2 + $0x38] sm:$0xff]  ;;  %v331_v49 = vadd.f32 %v330_v24, %v329_v36  ;;  %v371_v50 = vadd.f32 %v370_v31, %v369_v37  ;;  %929 = vmatpush3.msk.msra.mxu0 %vm422_vm5, %v1160_v18  ;;  %907 = vmatprep.mubr.msk.f32.mxu0 %vm981_vm7, %v980_v11  ;;  %v1215_v54 = vld [vmem:[%s1008_s16 + $0x10] sm:$0x1]  ;;  %v1218_v55 = vld [vmem:[%s1008_s16 + $0x28] sm:$0x1] }
  0x2e   : > { %v1208_v51 = vld [vmem:[%s1442_s2 + $0x58] sm:$0x1]  ;;  %v310_v52 = vsel %vm302_vm6, %v255_v38, 0.0  ;;  %v270_v53 = vmul.f32 %v222_v41, %v1178_v33  ;;  %930 = vmatprep.subr.mxu0 %v980_v11  ;;  %v311_v56 = vsel %vm302_vm6, %v258_v42, 0.0  ;;  %v313_v57 = vsel %vm302_vm6, %v261_v43, 0.0  ;;  %v1231_v61 = vld [vmem:[%s1442_s2 + $0x30] sm:$0xff] }
  0x2f   : > { %v315_v58 = vsel %vm302_vm6, %v264_v44, 0.0  ;;  %v273_v59 = vmul.f32 %v225_v45, %v1181_v34  ;;  %v1226_v60 = vld [vmem:[%s1008_s16 + $0x40] sm:$0x1]  ;;  %v373_v62 = vadd.f32 %v372_v32, %v371_v50  ;;  %v392_v63 = vmul.f32 0.25, %v331_v49  ;;  %931 = vmatpush3.msra.mxu0 %v1201_v48  ;;  %v1238_v2 = vld [vmem:[%s1442_s2 + $0x50] sm:$0xff]  ;;  %v231_v22 = vld [vmem:[%s1013_s19 + $0xc8] sm:$0xff] }
  0x30   : > { %v312_v0 = vadd.f32 %v311_v56, %v310_v52  ;;  %v276_v1 = vmul.f32 %v228_v46, %v1187_v39  ;;  %v1241_v3 = vld [vmem:[%s1008_s16 + $0x58] sm:$0x1]  ;;  %v208_v7 = vld [vmem:[%s1013_s19 + $0x10] sm:$0x1]  ;;  %v332_v8 = vsel %vm302_vm6, %v267_v47, 0.0  ;;  %v333_v16 = vsel %vm302_vm6, %v270_v53, 0.0  ;;  %932 = vmatprep.subr.mxu0 %v980_v11 }
  0x31   : > { %v335_v17 = vsel %vm302_vm6, %v273_v59, 0.0  ;;  %v211_v20 = vld [vmem:[%s1013_s19 + $0x28] sm:$0x1]  ;;  %v256_v21 = vmul.f32 %v208_v7, %v1215_v54  ;;  %v1251_v23 = vmul.f32 0.25, %v373_v62  ;;  %920 = vmatmul.mubr.msk.f32.vlgmr.msra.gmra.mxu1 %vm302_vm6, %v392_v63  ;;  %v334_v25 = vadd.f32 %v333_v16, %v332_v8  ;;  %v214_v27 = vld [vmem:[%s1013_s19 + $0x40] sm:$0x1]  ;;  %933 = vmatpush3.msra.mxu0 %v1231_v61 }
  0x32   : > { %v314_v24 = vadd.f32 %v313_v57, %v312_v0  ;;  %v337_v26 = vsel %vm302_vm6, %v276_v1, 0.0  ;;  %v217_v29 = vld [vmem:[%s1013_s19 + $0x58] sm:$0x1]  ;;  %v1261_v30 = vld [vmem:[%s1442_s2 + $0x48] sm:$0xff]  ;;  %944 = vmatpush3.msk.msra.mxu1 %vm422_vm5, %v1208_v51  ;;  %922 = vmatprep.mubr.msk.f32.mxu1 %vm981_vm7, %v980_v11  ;;  %v259_v31 = vmul.f32 %v211_v20, %v1218_v55  ;;  %v262_v32 = vmul.f32 %v214_v27, %v1226_v60  ;;  %v1272_v38 = vld [vmem:[%s1008_s16 + $0x70] sm:$0x1] }
  0x33   : > { %v265_v36 = vmul.f32 %v217_v29, %v1241_v3  ;;  %v318_v37 = vsel %vm317_vm8, %v256_v21, 0.0  ;;  %v1275_v40 = vld [vmem:[%s1008_s16 + $0x88] sm:$0x1]  ;;  %v234_v41 = vld [vmem:[%s1013_s19 + $0xe0] sm:$0xff]  ;;  %945 = vmatprep.subr.mxu1 %v980_v11  ;;  %v336_v43 = vadd.f32 %v335_v17, %v334_v25  ;;  %v1283_v45 = vld [vmem:[%s1008_s16 + $0xb8] sm:$0x1]  ;;  %v279_v47 = vmul.f32 %v231_v22, %v1146_v4 }
  0x34   : > { %v316_v42 = vadd.f32 %v315_v58, %v314_v24  ;;  %v1280_v44 = vld [vmem:[%s1008_s16 + $0xa0] sm:$0x1]  ;;  %v220_v46 = vld [vmem:[%s1013_s19 + $0x70] sm:$0x1]  ;;  %v282_v49 = vmul.f32 %v234_v41, %v1149_v5  ;;  %946 = vmatpush3.msra.mxu1 %v1238_v2  ;;  %v319_v50 = vsel %vm317_vm8, %v259_v31, 0.0  ;;  %v321_v52 = vsel %vm317_vm8, %v262_v32, 0.0 }
  0x35   : > { %v323_v53 = vsel %vm317_vm8, %v265_v36, 0.0  ;;  %v223_v56 = vld [vmem:[%s1013_s19 + $0x88] sm:$0x1]  ;;  %v268_v57 = vmul.f32 %v220_v46, %v1272_v38  ;;  %v237_v58 = vld [vmem:[%s1013_s19 + $0xf8] sm:$0xff]  ;;  %v338_v62 = vadd.f32 %v337_v26, %v336_v43  ;;  %947 = vmatprep.subr.mxu1 %v980_v11  ;;  %v320_v4 = vadd.f32 %v319_v50, %v318_v37  ;;  %v226_v5 = vld [vmem:[%s1013_s19 + $0xa0] sm:$0x1] }
  0x36   : > { %v390_v59 = vmul.f32 0.25, %v316_v42  ;;  %v229_v63 = vld [vmem:[%s1013_s19 + $0xb8] sm:$0x1]  ;;  %v271_v0 = vmul.f32 %v223_v56, %v1275_v40  ;;  %v240_v1 = vld [vmem:[%s1013_s19 + $0x110] sm:$0xff]  ;;  %v274_v7 = vmul.f32 %v226_v5, %v1280_v44  ;;  %948 = vmatpush3.msra.mxu1 %v1261_v30  ;;  %v285_v17 = vmul.f32 %v237_v58, %v1152_v6  ;;  %v243_v25 = vld [vmem:[%s1013_s19 + $0x128] sm:$0xff] }
  0x37   : > { %v277_v8 = vmul.f32 %v229_v63, %v1283_v45  ;;  %v339_v16 = vsel %vm317_vm8, %v268_v57, 0.0  ;;  %v393_v20 = vmul.f32 0.25, %v338_v62  ;;  %v322_v21 = vadd.f32 %v321_v52, %v320_v4  ;;  %v246_v26 = vld [vmem:[%s1013_s19 + $0x140] sm:$0xff]  ;;  %v249_v27 = vld [vmem:[%s1013_s19 + $0x158] sm:$0xff]  ;;  %v252_v36 = vld [vmem:[%s1013_s19 + $0x170] sm:$0xff] }
  0x38   : > { %908 = vmatmul.mubr.msk.f32.gmra.mxu0 %vm302_vm6, %v390_v59  ;;  %v340_v22 = vsel %vm317_vm8, %v271_v0, 0.0  ;;  %v288_v24 = vmul.f32 %v240_v1, %v1163_v19  ;;  %v342_v31 = vsel %vm317_vm8, %v274_v7, 0.0  ;;  %v353_v32 = vsel %vm302_vm6, %v279_v47, 0.0  ;;  %v232_v37 = vld [vmem:[%s1013_s19 + $0xd0] sm:$0x1] }
  0x39   : > { %910 = vmatprep.mubr.msk.f32.mxu0 %vm981_vm7, %v980_v11  ;;  %v341_v29 = vadd.f32 %v340_v22, %v339_v16  ;;  %v344_v6 = vsel %vm317_vm8, %v277_v8, 0.0  ;;  %923 = vmatmul.mubr.msk.f32.gmra.mxu1 %vm302_vm6, %v393_v20  ;;  %v324_v19 = vadd.f32 %v323_v53, %v322_v21  ;;  %v354_v41 = vsel %vm302_vm6, %v282_v49, 0.0  ;;  %v235_v56 = vld [vmem:[%s1013_s19 + $0xe8] sm:$0x1]  ;;  %v238_v58 = vld [vmem:[%s1013_s19 + $0x100] sm:$0x1] }
  0x3a   : > { %v356_v42 = vsel %vm302_vm6, %v285_v17, 0.0  ;;  %v358_v43 = vsel %vm302_vm6, %v288_v24, 0.0  ;;  %925 = vmatprep.mubr.msk.f32.mxu1 %vm981_vm7, %v980_v11  ;;  %v355_v50 = vadd.f32 %v354_v41, %v353_v32  ;;  %v291_v47 = vmul.f32 %v243_v25, %v1172_v28  ;;  %v241_v59 = vld [vmem:[%s1013_s19 + $0x118] sm:$0x1]  ;;  %v244_v0 = vld [vmem:[%s1013_s19 + $0x130] sm:$0x1] }
  0x3b   : > { %v343_v46 = vadd.f32 %v342_v31, %v341_v29  ;;  %v294_v52 = vmul.f32 %v246_v26, %v1178_v33  ;;  %v391_v57 = vmul.f32 0.25, %v324_v19  ;;  %v297_v53 = vmul.f32 %v249_v27, %v1181_v34  ;;  %v247_v17 = vld [vmem:[%s1013_s19 + $0x148] sm:$0x1]  ;;  %v250_v20 = vld [vmem:[%s1013_s19 + $0x160] sm:$0x1] }
  0x3c   : > { %v300_v49 = vmul.f32 %v252_v36, %v1187_v39  ;;  %v280_v62 = vmul.f32 %v232_v37, %v1215_v54  ;;  %v357_v5 = vadd.f32 %v356_v42, %v355_v50  ;;  %v374_v63 = vsel %vm302_vm6, %v291_v47, 0.0  ;;  %v253_v25 = vld [vmem:[%s1013_s19 + $0x178] sm:$0x1] }
  0x3d   : > { %v345_v4 = vadd.f32 %v344_v6, %v343_v46  ;;  %v375_v28 = vsel %vm302_vm6, %v294_v52, 0.0  ;;  %911 = vmatmul.mubr.msk.f32.gmra.mxu0 %vm302_vm6, %v391_v57  ;;  %v377_v34 = vsel %vm302_vm6, %v297_v53, 0.0  ;;  %v283_v1 = vmul.f32 %v235_v56, %v1218_v55 }
  0x3e   : > { %v376_v33 = vadd.f32 %v375_v28, %v374_v63  ;;  %v379_v39 = vsel %vm302_vm6, %v300_v49, 0.0  ;;  %934 = vmatprep.mubr.msk.f32.mxu0 %vm981_vm7, %v980_v11  ;;  %v359_v7 = vadd.f32 %v358_v43, %v357_v5  ;;  %v286_v8 = vmul.f32 %v238_v58, %v1226_v60 }
  0x3f   : > { %v394_v54 = vmul.f32 0.25, %v345_v4  ;;  %v289_v16 = vmul.f32 %v241_v59, %v1241_v3  ;;  %v360_v22 = vsel %vm317_vm8, %v280_v62, 0.0  ;;  %v361_v24 = vsel %vm317_vm8, %v283_v1, 0.0 }
  0x40   : > { %v378_v21 = vadd.f32 %v377_v34, %v376_v33  ;;  %v292_v26 = vmul.f32 %v244_v0, %v1272_v38  ;;  %v396_v55 = vmul.f32 0.25, %v359_v7  ;;  %v362_v27 = vadd.f32 %v361_v24, %v360_v22 }
  0x41   : > { %926 = vmatmul.mubr.msk.f32.gmra.mxu1 %vm302_vm6, %v394_v54  ;;  %v363_v29 = vsel %vm317_vm8, %v286_v8, 0.0  ;;  %v365_v60 = vsel %vm317_vm8, %v289_v16, 0.0  ;;  %935 = vmatmul.mubr.msk.f32.vlgmr.msra.gmra.mxu0 %vm302_vm6, %v1183_v35  ;;  %v295_v31 = vmul.f32 %v247_v17, %v1275_v40  ;;  %v298_v6 = vmul.f32 %v250_v20, %v1280_v44 }
  0x42   : > { %949 = vmatprep.mubr.msk.f32.mxu1 %vm981_vm7, %v980_v11  ;;  %v380_v3 = vadd.f32 %v379_v39, %v378_v21  ;;  %v381_v38 = vsel %vm317_vm8, %v292_v26, 0.0  ;;  %937 = vmatprep.mubr.msk.f32.mxu0 %vm981_vm7, %v980_v11  ;;  %v364_v32 = vadd.f32 %v363_v29, %v362_v27  ;;  %v301_v36 = vmul.f32 %v253_v25, %v1283_v45 }
  0x43   : > { %v382_v37 = vsel %vm317_vm8, %v295_v31, 0.0  ;;  %v384_v19 = vsel %vm317_vm8, %v298_v6, 0.0 }
  0x44   : > { %v399_v35 = vmul.f32 0.25, %v380_v3  ;;  %v366_v41 = vadd.f32 %v365_v60, %v364_v32  ;;  %v383_v40 = vadd.f32 %v382_v37, %v381_v38  ;;  %v386_v44 = vsel %vm317_vm8, %v301_v36, 0.0 }
  0x45   : > { %950 = vmatmul.mubr.msk.f32.vlgmr.msra.gmra.mxu1 %vm302_vm6, %v1251_v23  ;;  %938 = vmatmul.mubr.msk.f32.gmra.mxu0 %vm302_vm6, %v396_v55 }
  0x46   : > { %952 = vmatprep.mubr.msk.f32.mxu1 %vm981_vm7, %v980_v11  ;;  %940 = vmatprep.mubr.msk.f32.mxu0 %vm981_vm7, %v980_v11  ;;  %v397_v45 = vmul.f32 0.25, %v366_v41  ;;  %v385_v42 = vadd.f32 %v384_v19, %v383_v40 }
  0x48   : > { %v387_v43 = vadd.f32 %v386_v44, %v385_v42 }
  0x49   : > { %953 = vmatmul.mubr.msk.f32.gmra.mxu1 %vm302_vm6, %v399_v35  ;;  %941 = vmatmul.mubr.msk.f32.gmra.mxu0 %vm302_vm6, %v397_v45 }
  0x4a   : > { %955 = vmatprep.mubr.msk.f32.mxu1 %vm981_vm7, %v980_v11  ;;  %v400_v23 = vmul.f32 0.25, %v387_v43 }
  0x4d   : > { %956 = vmatmul.mubr.msk.f32.gmra.mxu1 %vm302_vm6, %v400_v23 }
  0xec   : > { %v492_v46 = vpop.f32.mrf.mxu0 }
  0xed   : > { %v782_v50 = vadd.f32 %v492_v46, %v1088_v14 }
  0xee   : > { %v906_v47 = vpop.f32.mrf.mxu0 }
  0xef   : > { %794 = vst.msk [vmem:[%s1442_s2] sm:$0xff] %vm302_vm6, %v782_v50 }
  0xf1   : > { %v584_v52 = vpop.f32.mrf.mxu1 }
  0xf2   : > { %v785_v56 = vadd.f32 %v584_v52, %v1097_v15 }
  0xf3   : > { %v921_v57 = vpop.f32.mrf.mxu1 }
  0xf4   : > { %797 = vst.msk [vmem:[%s1442_s2 + $0x18] sm:$0xff] %vm302_vm6, %v785_v56 }
  0xf8   : > { %v497_v11 = vpop.f32.mrf.mxu0 }
  0xf9   : > { %v783_v53 = vadd.f32 %v497_v11, %v1078_v12  ;;  %v589_v49 = vpop.f32.mrf.mxu1 }
  0xfa   : > { %v909_v14 = vpop.f32.mrf.mxu0  ;;  %v786_v58 = vadd.f32 %v589_v49, %v1083_v13 }
  0xfb   : > { %795 = vst.msk [vmem:[%s1442_s2 + $0x8] sm:$0xff] %vm302_vm6, %v783_v53  ;;  %v924_v59 = vpop.f32.mrf.mxu1 }
  0xfc   : > { %798 = vst.msk [vmem:[%s1442_s2 + $0x20] sm:$0xff] %vm302_vm6, %v786_v58 }
  0xfd   : > { %v502_v15 = vpop.f32.mrf.mxu0 }
  0xfe   : > { %v784_v62 = vadd.f32 %v502_v15, %v1066_v9 }
  0xff   : > { %v912_v4 = vpop.f32.mrf.mxu0 }
 0x100   : > { %796 = vst.msk [vmem:[%s1442_s2 + $0x10] sm:$0x1] %vm317_vm8, %v784_v62 }
 0x101   : > { %v594_v12 = vpop.f32.mrf.mxu1  ;;  %v676_v63 = vpop.f32.mrf.mxu0 }
 0x102   : > { %v787_v5 = vadd.f32 %v594_v12, %v1071_v10  ;;  %v788_v28 = vadd.f32 %v676_v63, %v1231_v61 }
 0x103   : > { %v927_v13 = vpop.f32.mrf.mxu1  ;;  %v936_v0 = vpop.f32.mrf.mxu0 }
 0x104   : > { %799 = vst.msk [vmem:[%s1442_s2 + $0x28] sm:$0x1] %vm317_vm8, %v787_v5 }
 0x105   : > { %800 = vst.msk [vmem:[%s1442_s2 + $0x30] sm:$0xff] %vm302_vm6, %v788_v28  ;;  %v768_v9 = vpop.f32.mrf.mxu1  ;;  %v681_v34 = vpop.f32.mrf.mxu0 }
 0x106   : > { %v791_v33 = vadd.f32 %v768_v9, %v1261_v30  ;;  %v789_v39 = vadd.f32 %v681_v34, %v1201_v48 }
 0x107   : > { %v951_v10 = vpop.f32.mrf.mxu1  ;;  %v939_v61 = vpop.f32.mrf.mxu0 }
 0x108   : > { %803 = vst.msk [vmem:[%s1442_s2 + $0x48] sm:$0xff] %vm302_vm6, %v791_v33  ;;  %801 = vst.msk [vmem:[%s1442_s2 + $0x38] sm:$0xff] %vm302_vm6, %v789_v39 }
 0x109   : > { %v773_v1 = vpop.f32.mrf.mxu1  ;;  %v686_v7 = vpop.f32.mrf.mxu0 }
 0x10a   : > { %v792_v54 = vadd.f32 %v773_v1, %v1238_v2  ;;  %v790_v8 = vadd.f32 %v686_v7, %v1160_v18 }
 0x10b   : > { %v954_v30 = vpop.f32.mrf.mxu1  ;;  %v942_v48 = vpop.f32.mrf.mxu0 }
 0x10c   : > { %804 = vst.msk [vmem:[%s1442_s2 + $0x50] sm:$0xff] %vm302_vm6, %v792_v54 }
 0x10d   : > { %802 = vst.msk [vmem:[%s1442_s2 + $0x40] sm:$0x1] %vm317_vm8, %v790_v8  ;;  %v778_v16 = vpop.f32.mrf.mxu1 }
 0x10e   : > { %v793_v17 = vadd.f32 %v778_v16, %v1208_v51 }
 0x10f   : > { %v957_v20 = vpop.f32.mrf.mxu1 }
 0x110   : > { %805 = vst.msk [vmem:[%s1442_s2 + $0x58] sm:$0x1] %vm317_vm8, %v793_v17 }
 0x111 PF: > { %s12_s9 = sadd.s32 1, %s977_s9  }
 0x112   : > { %p9_p5 = scmp.ge.s32.totalorder %s12_s9, 4  }
 0x114   :  { %11 = sbr.rel (!%p9_p5) target bundleno = 1 (0x1), region = 61 }

</bundles_post_ra>
